<compile_context>
chip_gen: v5e
topology: v5e:2x2
jax: 0.10.0
libtpu: 0.0.40
codegen_flags: <defaults>
</compile_context>

<pallas_src>
import jax
import jax.numpy as jnp
from jax.experimental import pallas as pl
from jax.experimental.pallas import tpu as pltpu


def _round_up(x, m):
    return ((x + m - 1) // m) * m


def _vmem_capacity_bytes():
    try:
        return int(pltpu.get_tpu_info().vmem_capacity_bytes)
    except Exception:
        return 64 * 1024 * 1024  # conservative (v7x per-TC VMEM)


# ---------------------------------------------------------------------------
# Kernels
# ---------------------------------------------------------------------------
def _decoder_kernel_cached(x_ref, w1_ref, b1_ref, w2_ref, b2_ref, o_ref, h_ref):
    # Grid = (batch tiles i, output-column tiles j); j is the innermost,
    # sequentially iterated ("arbitrary") axis, so fc1 is computed once per
    # batch tile (j == 0) and its activations stay resident in VMEM scratch.
    j = pl.program_id(1)

    @pl.when(j == 0)
    def _():
        h = jnp.dot(x_ref[...], w1_ref[...], preferred_element_type=jnp.float32)
        h = h + b1_ref[...]                  # bias add in f32
        h = jnp.maximum(h, 0.2 * h)          # LeakyReLU(0.2): single vmax on VPU
        h_ref[...] = h.astype(h_ref.dtype)   # one bf16 cast feeding fc2's MXU

    out = jnp.dot(h_ref[...], w2_ref[...], preferred_element_type=jnp.float32)
    o_ref[...] = (out + b2_ref[...]).astype(o_ref.dtype)


def _decoder_kernel_recompute(x_ref, w1_ref, b1_ref, w2_ref, b2_ref, o_ref):
    # Small-batch path: fc1 FLOPs are trivial, so recompute them per output
    # tile. No cross-iteration scratch -> every (i, j) is independent and both
    # grid axes can be "parallel" (lets v7x's second TensorCore split N).
    h = jnp.dot(x_ref[...], w1_ref[...], preferred_element_type=jnp.float32)
    h = h + b1_ref[...]
    h = jnp.maximum(h, 0.2 * h)
    h = h.astype(w2_ref.dtype)
    out = jnp.dot(h, w2_ref[...], preferred_element_type=jnp.float32)
    o_ref[...] = (out + b2_ref[...]).astype(o_ref.dtype)


# ---------------------------------------------------------------------------
# One-time weight prep (do NOT re-run per forward call)
# ---------------------------------------------------------------------------
def prepare_decoder_params(w1, b1, w2, b2, *, lane=128):
    """Casts weights to bf16 (MXU inputs), keeps biases in f32, and pads fc2's
    output dim up to a lane multiple ONCE so the forward never pads weights."""
    out_dim = w2.shape[1]
    n_pad = _round_up(out_dim, lane)
    if n_pad != out_dim:
        w2 = jnp.pad(w2, ((0, 0), (0, n_pad - out_dim)))
        b2 = jnp.pad(b2, ((0, 0), (0, n_pad - out_dim)))
    return (w1.astype(jnp.bfloat16), b1.astype(jnp.float32),
            w2.astype(jnp.bfloat16), b2.astype(jnp.float32), out_dim)


# ---------------------------------------------------------------------------
# Forward
# ---------------------------------------------------------------------------
def decoder_imagenet_forward(x, w1, b1, w2, b2, *, out_dim=None,
                             block_b=256, block_n=None,
                             out_dtype=jnp.bfloat16):
    """x: (B, hidden) bf16; w1: (hidden, mid) bf16; b1: (1, mid) f32;
    w2: (mid, n_pad) bf16 (n_pad = out padded to 128); b2: (1, n_pad) f32.
    Returns (B, out_dim) in out_dtype."""
    B, hidden = x.shape
    mid, n_pad = w2.shape
    assert w1.shape == (hidden, mid)
    assert b1.shape == (1, mid) and b2.shape == (1, n_pad)
    if out_dim is None:
        out_dim = n_pad

    if n_pad % 128 != 0:
        # Fallback only — prefer prepare_decoder_params (one-time copy).
        pad = _round_up(n_pad, 128) - n_pad
        w2 = jnp.pad(w2, ((0, 0), (0, pad)))
        b2 = jnp.pad(b2, ((0, 0), (0, pad)))
        n_pad += pad

    vmem_cap = _vmem_capacity_bytes()
    big_vmem = vmem_cap >= 96 * 1024 * 1024  # v5e/v6e (128 MiB) vs v7x (64 MiB)

    # Generation-aware default N tile: smaller W2 panels on v7x's 64 MiB VMEM.
    if block_n is None:
        block_n = 1024 if big_vmem else 512

    x_it = x.dtype.itemsize
    w_it = w1.dtype.itemsize
    o_it = jnp.dtype(out_dtype).itemsize

    # Tile sizes: batch tile multiple of 8 (sublane), N tile multiple of 128
    # (lane-dense unmasked stores) that divides the padded output dim.
    TB = min(block_b, _round_up(B, 8))
    TN = min(block_n, n_pad)
    while n_pad % TN:
        TN -= 128
    w2_bufs = 3 if big_vmem else 2  # deeper W2 pipelining where VMEM allows

    def working_set(tb, tn, w2b, w1b=2):
        # Conservative (assumes double-buffered resident W1 in case the
        # single-buffer build falls back).
        return (2 * tb * hidden * x_it          # x tiles
                + w1b * hidden * mid * w_it     # resident W1
                + w1b * 8 * mid * 4             # b1 (sublane-padded, f32)
                + w2b * mid * tn * w_it         # streamed W2 panels
                + w2b * 8 * tn * 4              # b2 panels
                + 2 * tb * tn * o_it            # output tiles
                + tb * mid * 2)                 # fc1 activation scratch (bf16)

    # Shrink until the pipeline's VMEM working set fits with headroom.
    headroom = 16 * 1024 * 1024
    while working_set(TB, TN, w2_bufs) > vmem_cap - headroom:
        if w2_bufs > 2:
            w2_bufs -= 1
        elif TN > 128:
            TN -= 128
            while n_pad % TN:
                TN -= 128
        elif TB > 8:
            TB = max(8, _round_up(TB // 2, 8))
        else:
            break

    Bp = _round_up(B, TB)
    grid_i = Bp // TB
    grid_j = n_pad // TN
    if grid_j < w2_bufs:
        w2_bufs = 2

    # Small-batch regime: one batch tile -> recompute fc1 per N tile and make
    # the N axis "parallel" so both TensorCores (v7x) split the columns.
    small_batch = (grid_i == 1) and (Bp <= 256)

    needed = working_set(TB, TN, w2_bufs)
    vmem_limit_bytes = int(max(32 * 1024 * 1024,
                               min(vmem_cap - 4 * 1024 * 1024,
                                   needed + 12 * 1024 * 1024)))

    # Cost estimate: count W2/b2 reads once per batch tile (they are
    # re-streamed grid_i times); fc1 FLOPs grid_j times on the recompute path.
    fc1_flops = 2 * Bp * hidden * mid * (grid_j if small_batch else 1)
    flops = fc1_flops + 2 * Bp * mid * n_pad
    bytes_accessed = (Bp * hidden * x_it
                      + hidden * mid * w_it + mid * 4
                      + grid_i * (mid * n_pad * w_it + n_pad * 4)
                      + Bp * n_pad * o_it)

    def build(use_pipeline_modes):
        resident_mode = pl.Buffered(1) if use_pipeline_modes else None
        w2_mode = (pl.Buffered(w2_bufs)
                   if (use_pipeline_modes and w2_bufs != 2) else None)
        in_specs = [
            pl.BlockSpec((TB, hidden), lambda i, j: (i, 0)),           # x: per batch tile
            pl.BlockSpec((hidden, mid), lambda i, j: (0, 0),
                         pipeline_mode=resident_mode),                 # W1: resident, 1 buf
            pl.BlockSpec((1, mid), lambda i, j: (0, 0),
                         pipeline_mode=resident_mode),                 # b1: resident
            pl.BlockSpec((mid, TN), lambda i, j: (0, j),
                         pipeline_mode=w2_mode),                       # W2: streamed panels
            pl.BlockSpec((1, TN), lambda i, j: (0, j),
                         pipeline_mode=w2_mode),                       # b2: streamed
        ]
        if small_batch:
            kernel = _decoder_kernel_recompute
            scratch = []
            semantics = ("parallel", "parallel")
        else:
            kernel = _decoder_kernel_cached
            scratch = [pltpu.VMEM((TB, mid), jnp.bfloat16)]            # fc1 activations
            semantics = ("parallel", "arbitrary")
        return pl.pallas_call(
            kernel,
            out_shape=jax.ShapeDtypeStruct((Bp, n_pad), out_dtype),
            grid_spec=pltpu.PrefetchScalarGridSpec(
                num_scalar_prefetch=0,
                grid=(grid_i, grid_j),
                in_specs=in_specs,
                out_specs=pl.BlockSpec((TB, TN), lambda i, j: (i, j)),
                scratch_shapes=scratch),
            compiler_params=pltpu.CompilerParams(
                dimension_semantics=semantics,
                vmem_limit_bytes=vmem_limit_bytes),
            cost_estimate=pl.CostEstimate(flops=flops, transcendentals=0,
                                          bytes_accessed=bytes_accessed),
        )

    xp = x if Bp == B else jnp.pad(x, ((0, Bp - B), (0, 0)))
    try:
        out = build(True)(xp, w1, b1, w2, b2)
    except Exception:
        # Fallback if this toolchain rejects pipeline_mode=pl.Buffered(...).
        out = build(False)(xp, w1, b1, w2, b2)

    return out[:B, :out_dim]


# ---------------------------------------------------------------------------
# Params / reference / demo
# ---------------------------------------------------------------------------
def init_params(key, hidden_size, mid_size, output_size):
    """Deterministic synthetic params matching nn.Linear init (stored transposed)."""
    k1, k2, k3, k4 = jax.random.split(key, 4)
    s1 = 1.0 / jnp.sqrt(hidden_size)
    s2 = 1.0 / jnp.sqrt(mid_size)
    w1 = jax.random.uniform(k1, (hidden_size, mid_size), jnp.float32, -s1, s1)
    b1 = jax.random.uniform(k2, (1, mid_size), jnp.float32, -s1, s1)
    w2 = jax.random.uniform(k3, (mid_size, output_size), jnp.float32, -s2, s2)
    b2 = jax.random.uniform(k4, (1, output_size), jnp.float32, -s2, s2)
    return w1, b1, w2, b2


def reference_forward(x, w1, b1, w2, b2):
    # Same numerics as the kernel: bf16 operands, f32 accumulation, f32
    # elementwise, one bf16 round-trip on the fc1 activations.
    h = jnp.dot(x.astype(jnp.float32), w1.astype(jnp.float32)) + b1
    h = jnp.maximum(h, 0.2 * h)
    h = h.astype(jnp.bfloat16).astype(jnp.float32)
    return jnp.dot(h, w2.astype(jnp.float32)) + b2


if __name__ == "__main__":
    batch = 8
    hidden_size = 32
    mid_size = 64
    output_size = 128

    key = jax.random.PRNGKey(0)
    kx, kp = jax.random.split(key)
    x = jax.random.normal(kx, (batch, hidden_size), dtype=jnp.float32).astype(jnp.bfloat16)
    w1, b1, w2, b2 = init_params(kp, hidden_size, mid_size, output_size)
    w1p, b1p, w2p, b2p, out_dim = prepare_decoder_params(w1, b1, w2, b2)

    out = decoder_imagenet_forward(x, w1p, b1p, w2p, b2p, out_dim=out_dim)
    out = jax.block_until_ready(out)

    ref = reference_forward(x, w1p, b1p, w2p, b2p)[:, :out_dim]
    assert out.shape == (batch, output_size)
    out_f32 = out.astype(jnp.float32)
    err = float(jnp.max(jnp.abs(out_f32 - ref)))
    assert jnp.allclose(out_f32, ref, atol=3e-2, rtol=3e-2), err

    print("KERNEL_OK")
</pallas_src>

<mosaic_0001>
module attributes {stable_mosaic.version = 11 : i64} {
  func.func @_decoder_kernel_recompute(%arg0: i32, %arg1: i32, %arg2: memref<8x32xbf16, #tpu.memory_space<vmem>>, %arg3: memref<32x64xbf16, #tpu.memory_space<vmem>>, %arg4: memref<1x64xf32, #tpu.memory_space<vmem>>, %arg5: memref<64x128xbf16, #tpu.memory_space<vmem>>, %arg6: memref<1x128xf32, #tpu.memory_space<vmem>>, %arg7: memref<8x128xbf16, #tpu.memory_space<vmem>>) attributes {dimension_semantics = [#tpu.dimension_semantics<parallel>, #tpu.dimension_semantics<parallel>], iteration_bounds = array<i64: 1, 1>, scalar_prefetch = 0 : i64, scratch_operands = 0 : i64, tpu.core_type = #tpu.core_type<tc>, window_params = [{transform_indices = @transform_0, window_bounds = array<i64: 8, 32>}, {pipeline_mode = #tpu.pipeline_mode<synchronous>, transform_indices = @transform_1, window_bounds = array<i64: 32, 64>}, {pipeline_mode = #tpu.pipeline_mode<synchronous>, transform_indices = @transform_2, window_bounds = array<i64: 1, 64>}, {transform_indices = @transform_3, window_bounds = array<i64: 64, 128>}, {transform_indices = @transform_4, window_bounds = array<i64: 1, 128>}, {transform_indices = @transform_5, window_bounds = array<i64: 8, 128>}]} {
    %c0 = arith.constant 0 : index
    %c0_0 = arith.constant 0 : index
    %0 = vector.load %arg2[%c0, %c0_0] : memref<8x32xbf16, #tpu.memory_space<vmem>>, vector<8x32xbf16>
    %c0_1 = arith.constant 0 : index
    %c0_2 = arith.constant 0 : index
    %1 = vector.load %arg3[%c0_1, %c0_2] : memref<32x64xbf16, #tpu.memory_space<vmem>>, vector<32x64xbf16>
    %cst = arith.constant dense<0.000000e+00> : vector<8x64xf32>
    %2 = tpu.matmul %0, %1, %cst {dimension_numbers = #tpu.dot_dimension_numbers<[1], [0], [0], [1], [0, 0, 1, 1], [], []>} : vector<8x32xbf16>, vector<32x64xbf16>, vector<8x64xf32> -> vector<8x64xf32>
    %c0_3 = arith.constant 0 : index
    %c0_4 = arith.constant 0 : index
    %3 = vector.load %arg4[%c0_3, %c0_4] : memref<1x64xf32, #tpu.memory_space<vmem>>, vector<1x64xf32>
    %4 = vector.broadcast %3 : vector<1x64xf32> to vector<8x64xf32>
    %5 = arith.addf %2, %4 : vector<8x64xf32>
    %cst_5 = arith.constant 2.000000e-01 : f32
    %6 = vector.broadcast %cst_5 : f32 to vector<8x64xf32>
    %7 = arith.mulf %6, %5 : vector<8x64xf32>
    %8 = arith.maximumf %5, %7 : vector<8x64xf32>
    %9 = arith.truncf %8 : vector<8x64xf32> to vector<8x64xbf16>
    %c0_6 = arith.constant 0 : index
    %c0_7 = arith.constant 0 : index
    %10 = vector.load %arg5[%c0_6, %c0_7] : memref<64x128xbf16, #tpu.memory_space<vmem>>, vector<64x128xbf16>
    %cst_8 = arith.constant dense<0.000000e+00> : vector<8x128xf32>
    %11 = tpu.matmul %9, %10, %cst_8 {dimension_numbers = #tpu.dot_dimension_numbers<[1], [0], [0], [1], [0, 0, 1, 1], [], []>} : vector<8x64xbf16>, vector<64x128xbf16>, vector<8x128xf32> -> vector<8x128xf32>
    %c0_9 = arith.constant 0 : index
    %c0_10 = arith.constant 0 : index
    %12 = vector.load %arg6[%c0_9, %c0_10] : memref<1x128xf32, #tpu.memory_space<vmem>>, vector<1x128xf32>
    %13 = vector.broadcast %12 : vector<1x128xf32> to vector<8x128xf32>
    %14 = arith.addf %11, %13 : vector<8x128xf32>
    %15 = arith.truncf %14 : vector<8x128xf32> to vector<8x128xbf16>
    %c0_11 = arith.constant 0 : index
    %c0_12 = arith.constant 0 : index
    %16 = vector.load %arg7[%c0_11, %c0_12] : memref<8x128xbf16, #tpu.memory_space<vmem>>, vector<8x128xbf16>
    tpu.vector_store %arg7[%c0_11, %c0_12], %15 {strides = array<i32>} : memref<8x128xbf16, #tpu.memory_space<vmem>>, vector<8x128xbf16>,
    return
  }
  func.func @transform_0(%arg0: i32, %arg1: i32) -> (i32, i32) {
    %c0_i32 = arith.constant 0 : i32
    %c0_i32_0 = arith.constant 0 : i32
    return %arg0, %c0_i32 : i32, i32
  }
  func.func @transform_1(%arg0: i32, %arg1: i32) -> (i32, i32) {
    %c0_i32 = arith.constant 0 : i32
    %c0_i32_0 = arith.constant 0 : i32
    %c0_i32_1 = arith.constant 0 : i32
    return %c0_i32, %c0_i32_0 : i32, i32
  }
  func.func @transform_2(%arg0: i32, %arg1: i32) -> (i32, i32) {
    %c0_i32 = arith.constant 0 : i32
    %c0_i32_0 = arith.constant 0 : i32
    %c0_i32_1 = arith.constant 0 : i32
    return %c0_i32, %c0_i32_0 : i32, i32
  }
  func.func @transform_3(%arg0: i32, %arg1: i32) -> (i32, i32) {
    %c0_i32 = arith.constant 0 : i32
    %c0_i32_0 = arith.constant 0 : i32
    return %c0_i32, %arg1 : i32, i32
  }
  func.func @transform_4(%arg0: i32, %arg1: i32) -> (i32, i32) {
    %c0_i32 = arith.constant 0 : i32
    %c0_i32_0 = arith.constant 0 : i32
    return %c0_i32, %arg1 : i32, i32
  }
  func.func @transform_5(%arg0: i32, %arg1: i32) -> (i32, i32) {
    %c0_i32 = arith.constant 0 : i32
    return %arg0, %arg1 : i32, i32
  }
}

module attributes {stable_mosaic.version = 11 : i64} {
  func.func @_decoder_kernel_recompute(%arg0: i32, %arg1: i32, %arg2: memref<8x32xbf16, #tpu.memory_space<vmem>>, %arg3: memref<32x64xbf16, #tpu.memory_space<vmem>>, %arg4: memref<1x64xf32, #tpu.memory_space<vmem>>, %arg5: memref<64x128xbf16, #tpu.memory_space<vmem>>, %arg6: memref<1x128xf32, #tpu.memory_space<vmem>>, %arg7: memref<8x128xbf16, #tpu.memory_space<vmem>>) attributes {dimension_semantics = [#tpu.dimension_semantics<parallel>, #tpu.dimension_semantics<parallel>], iteration_bounds = array<i64: 1, 1>, scalar_prefetch = 0 : i64, scratch_operands = 0 : i64, tpu.core_type = #tpu.core_type<tc>, window_params = [{transform_indices = @transform_0, window_bounds = array<i64: 8, 32>}, {pipeline_mode = #tpu.pipeline_mode<synchronous>, transform_indices = @transform_1, window_bounds = array<i64: 32, 64>}, {pipeline_mode = #tpu.pipeline_mode<synchronous>, transform_indices = @transform_2, window_bounds = array<i64: 1, 64>}, {transform_indices = @transform_3, window_bounds = array<i64: 64, 128>}, {transform_indices = @transform_4, window_bounds = array<i64: 1, 128>}, {transform_indices = @transform_5, window_bounds = array<i64: 8, 128>}]} {
    %c0 = arith.constant 0 : index
    %c0_0 = arith.constant 0 : index
    %0 = vector.load %arg2[%c0, %c0_0] : memref<8x32xbf16, #tpu.memory_space<vmem>>, vector<8x32xbf16>
    %c0_1 = arith.constant 0 : index
    %c0_2 = arith.constant 0 : index
    %1 = vector.load %arg3[%c0_1, %c0_2] : memref<32x64xbf16, #tpu.memory_space<vmem>>, vector<32x64xbf16>
    %cst = arith.constant dense<0.000000e+00> : vector<8x64xf32>
    %2 = tpu.matmul %0, %1, %cst {dimension_numbers = #tpu.dot_dimension_numbers<[1], [0], [0], [1], [0, 0, 1, 1], [], []>} : vector<8x32xbf16>, vector<32x64xbf16>, vector<8x64xf32> -> vector<8x64xf32>
    %c0_3 = arith.constant 0 : index
    %c0_4 = arith.constant 0 : index
    %3 = vector.load %arg4[%c0_3, %c0_4] : memref<1x64xf32, #tpu.memory_space<vmem>>, vector<1x64xf32>
    %4 = vector.broadcast %3 : vector<1x64xf32> to vector<8x64xf32>
    %5 = arith.addf %2, %4 : vector<8x64xf32>
    %cst_5 = arith.constant 2.000000e-01 : f32
    %6 = vector.broadcast %cst_5 : f32 to vector<8x64xf32>
    %7 = arith.mulf %6, %5 : vector<8x64xf32>
    %8 = arith.maximumf %5, %7 : vector<8x64xf32>
    %9 = arith.truncf %8 : vector<8x64xf32> to vector<8x64xbf16>
    %c0_6 = arith.constant 0 : index
    %c0_7 = arith.constant 0 : index
    %10 = vector.load %arg5[%c0_6, %c0_7] : memref<64x128xbf16, #tpu.memory_space<vmem>>, vector<64x128xbf16>
    %cst_8 = arith.constant dense<0.000000e+00> : vector<8x128xf32>
    %11 = tpu.matmul %9, %10, %cst_8 {dimension_numbers = #tpu.dot_dimension_numbers<[1], [0], [0], [1], [0, 0, 1, 1], [], []>} : vector<8x64xbf16>, vector<64x128xbf16>, vector<8x128xf32> -> vector<8x128xf32>
    %c0_9 = arith.constant 0 : index
    %c0_10 = arith.constant 0 : index
    %12 = vector.load %arg6[%c0_9, %c0_10] : memref<1x128xf32, #tpu.memory_space<vmem>>, vector<1x128xf32>
    %13 = vector.broadcast %12 : vector<1x128xf32> to vector<8x128xf32>
    %14 = arith.addf %11, %13 : vector<8x128xf32>
    %15 = arith.truncf %14 : vector<8x128xf32> to vector<8x128xbf16>
    %c0_11 = arith.constant 0 : index
    %c0_12 = arith.constant 0 : index
    %16 = vector.load %arg7[%c0_11, %c0_12] : memref<8x128xbf16, #tpu.memory_space<vmem>>, vector<8x128xbf16>
    tpu.vector_store %arg7[%c0_11, %c0_12], %15 {strides = array<i32>} : memref<8x128xbf16, #tpu.memory_space<vmem>>, vector<8x128xbf16>,
    return
  }
  func.func @transform_0(%arg0: i32, %arg1: i32) -> (i32, i32) {
    %c0_i32 = arith.constant 0 : i32
    %c0_i32_0 = arith.constant 0 : i32
    return %arg0, %c0_i32 : i32, i32
  }
  func.func @transform_1(%arg0: i32, %arg1: i32) -> (i32, i32) {
    %c0_i32 = arith.constant 0 : i32
    %c0_i32_0 = arith.constant 0 : i32
    %c0_i32_1 = arith.constant 0 : i32
    return %c0_i32, %c0_i32_0 : i32, i32
  }
  func.func @transform_2(%arg0: i32, %arg1: i32) -> (i32, i32) {
    %c0_i32 = arith.constant 0 : i32
    %c0_i32_0 = arith.constant 0 : i32
    %c0_i32_1 = arith.constant 0 : i32
    return %c0_i32, %c0_i32_0 : i32, i32
  }
  func.func @transform_3(%arg0: i32, %arg1: i32) -> (i32, i32) {
    %c0_i32 = arith.constant 0 : i32
    %c0_i32_0 = arith.constant 0 : i32
    return %c0_i32, %arg1 : i32, i32
  }
  func.func @transform_4(%arg0: i32, %arg1: i32) -> (i32, i32) {
    %c0_i32 = arith.constant 0 : i32
    %c0_i32_0 = arith.constant 0 : i32
    return %c0_i32, %arg1 : i32, i32
  }
  func.func @transform_5(%arg0: i32, %arg1: i32) -> (i32, i32) {
    %c0_i32 = arith.constant 0 : i32
    return %arg0, %arg1 : i32, i32
  }
}

</mosaic_0001>

<bundles_post_ra>
// kernel: tpu_custom_call.1
= control target key start
LH: loop header
LB: loop body
LE: loop exit
PB: predicated region body
PF: predicated region fallthrough
CT: control target
= control target key end

     0   :  { %10 = vsyncpa [#allocation3], 0  ;;  %s377_s0 = inlined_call_operand.hbm [shape: bf16[8,32], index: 0, kind: input, shape index: {}]   ;;  %s378_s1 = inlined_call_operand.hbm [shape: bf16[32,64], index: 1, kind: input, shape index: {}]   ;;  %s379_s2 = inlined_call_operand.vmem [shape: f32[1,64], index: 2, kind: input, shape index: {}]   ;;  %s380_s3 = inlined_call_operand.hbm [shape: bf16[64,128], index: 3, kind: input, shape index: {}]   ;;  %s381_s4 = inlined_call_operand.vmem [shape: f32[1,128], index: 4, kind: input, shape index: {}]   ;;  %s382_s5 = inlined_call_operand.hbm [shape: bf16[8,128], index: 5, kind: output, shape index: {}]  }
   0x1   :  { %11 = vsyncpa [#allocation6], 0  ;;  %s28_s20 = sshll.u32 %s378_s1, 4  ;;  %s29_s20 = int_to_ptr.hbm [resolvable:$true] %s28_s20 }
   0x2   :  { %12 = vsyncpa [#allocation4], 0  ;;  %s323_s21 = smov [#allocation5]   ;;  %s18_s25 = sshll.u32 %s377_s0, 4  ;;  %s19_s25 = int_to_ptr.hbm [resolvable:$true] %s18_s25 }
   0x3   :  { %s30_s22 = sshll.u32 %s323_s21, 4  ;;  %s324_s26 = smov 64   ;;  %s31_s22 = int_to_ptr.vmem [resolvable:$true] %s30_s22 }
   0x4   :  { %s325_s27 = smov 4   ;;  %s326_s28 = smov [#allocation2]  }
   0x5   :  { %36 = dma.hbm_to_vmem [thread:$0]  %s29_s20, 256, %s31_s22, [#allocation6], %s324_s26, %s324_s26, %s325_s27  }
   0x6   :  { %s20_s29 = sshll.u32 %s326_s28, 4  ;;  %s43_s7 = sshll.u32 %s380_s3, 4  ;;  %s21_s29 = int_to_ptr.vmem [resolvable:$true] %s20_s29  ;;  %s44_s7 = int_to_ptr.hbm [resolvable:$true] %s43_s7 }
   0x7   :  { %23 = dma.hbm_to_vmem [thread:$0]  %s19_s25, 64, %s21_s29, [#allocation3]  }
   0x8   :  { %s327_s1 = smov [#allocation7]  }
   0x9   :  { %s45_s8 = sshll.u32 %s327_s1, 4  ;;  %s46_s8 = int_to_ptr.vmem [resolvable:$true] %s45_s8 }
   0xa   :  { %51 = dma.hbm_to_vmem [thread:$0]  %s44_s7, 512, %s46_s8, [#allocation6], %s324_s26, %s324_s26, %s325_s27  }
   0xb   :  { %317 = dma.done.wait [#allocation3], 64  }
   0xc   :  { %318 = vsyncadd [#allocation3], 4294967232 }
   0xd   :  { %319 = dma.done.wait [#allocation6], 768  }
   0xe   :  { %320 = vsyncadd [#allocation6], 4294966528  ;;  %v208_v0 = vld [vmem:[#allocation5 + $0x8] sm:$0xff]  ;;  %v207_v2 = vld [vmem:[#allocation5] sm:$0xff]  ;;  %vm88_vm0 = vcmask 261120   ;;  %vm144_vm1 = vcmask 523264  }
   0xf   :  { %v212_v1 = vld [vmem:[#allocation7 + $0x18] sm:$0xff]  ;;  %98 = vmatpush.bf16.msra.mxu0 %v208_v0  ;;  %v211_v3 = vld [vmem:[#allocation7 + $0x10] sm:$0xff]  ;;  %v67_v4 = vld [vmem:[#allocation2] sm:$0xf]  ;;  %s328_s11 = smov [#allocation8]   ;;  %s170_s15 = sshll.u32 %s382_s5, 4  ;;  %s171_s15 = int_to_ptr.hbm [resolvable:$true] %s170_s15 }
  0x10   :  { %152 = vmatpush.bf16.msra.mxu1 %v212_v1  ;;  %v210_v5 = vld [vmem:[#allocation7 + $0x8] sm:$0xff]  ;;  %v209_v6 = vld [vmem:[#allocation7] sm:$0xff]  ;;  %s168_s12 = sshll.u32 %s328_s11, 4  ;;  %s169_s12 = int_to_ptr.vmem [resolvable:$true] %s168_s12 }
  0x11   :  { %v219_v7 = vld [vmem:[%s379_s2] ss:$0 sm:$0xff] }
  0x12   :  { %v220_v14 = vld [vmem:[%s381_s4] ss:$0 sm:$0xff] }
  0x13   :  { %99 = vmatpush.bf16.msra.mxu0 %v207_v2 }
  0x14   :  { %153 = vmatpush.bf16.msra.mxu1 %v211_v3 }
  0x16   :  { %189 = vmatmul.msk.bf16.vlgmr.msra.gmra.mxu0 %vm88_vm0, %v67_v4 }
  0x18   :  { %154 = vmatpush.bf16.msra.mxu1 %v210_v5 }
  0x1c   :  { %155 = vmatpush.bf16.msra.mxu1 %v209_v6 }
  0x93   :  { %v101_v8 = vpop.f32.mrf.mxu0 }
  0x94   :  { %v102_v9 = vadd.f32 %v219_v7, %v101_v8 }
  0x96   :  { %v105_v10 = vmul.f32 0.2, %v102_v9 }
  0x98   :  { %v106_v11 = vmax.f32 %v102_v9, %v105_v10 }
  0x9a   :  { %v107_v12 = vpack.c.bf16 %v106_v11, %v106_v11 }
  0x9b   :  { %v103_v13 = vpop.f32.mrf.mxu0 }
  0x9c   :  { %206 = vmatmul.msk.bf16.vlgmr.msra.gmra.mxu1 %vm144_vm1, %v107_v12 }
 0x119   :  { %v157_v15 = vpop.f32.mrf.mxu1 }
 0x11a   :  { %v158_v16 = vadd.f32 %v220_v14, %v157_v15 }
 0x11c   :  { %v161_v17 = vpack.c.bf16 %v158_v16, %v158_v16 }
 0x11e   :  { %162 = vst [vmem:[#allocation8] sm:$0xf] %v161_v17 }
 0x11f   :  { %173 = dma.vmem_to_hbm [thread:$0]  %s169_s12, 64, %s171_s15, [#allocation4]  }
 0x121   :  { %v159_v18 = vpop.f32.mrf.mxu1 }
 0x122   :  { %321 = dma.done.wait [#allocation4], 64  }
 0x123   :  { %322 = vsyncadd [#allocation4], 4294967232 }
 0x124   :  { %178 = vsyncpa [#allocation3], 1 }
 0x125   :  { %179 = vsyncpa [#allocation6], 1 }
 0x126   :  { %180 = vsyncpa [#allocation4], 1 }

// kernel: tpu_custom_call.1
= control target key start
LH: loop header
LB: loop body
LE: loop exit
PB: predicated region body
PF: predicated region fallthrough
CT: control target
= control target key end

     0   :  { %10 = vsyncpa [#allocation3], 0  ;;  %s377_s0 = inlined_call_operand.hbm [shape: bf16[8,32], index: 0, kind: input, shape index: {}]   ;;  %s378_s1 = inlined_call_operand.hbm [shape: bf16[32,64], index: 1, kind: input, shape index: {}]   ;;  %s379_s2 = inlined_call_operand.vmem [shape: f32[1,64], index: 2, kind: input, shape index: {}]   ;;  %s380_s3 = inlined_call_operand.hbm [shape: bf16[64,128], index: 3, kind: input, shape index: {}]   ;;  %s381_s4 = inlined_call_operand.vmem [shape: f32[1,128], index: 4, kind: input, shape index: {}]   ;;  %s382_s5 = inlined_call_operand.hbm [shape: bf16[8,128], index: 5, kind: output, shape index: {}]  }
   0x1   :  { %11 = vsyncpa [#allocation6], 0  ;;  %s28_s20 = sshll.u32 %s378_s1, 4  ;;  %s29_s20 = int_to_ptr.hbm [resolvable:$true] %s28_s20 }
   0x2   :  { %12 = vsyncpa [#allocation4], 0  ;;  %s323_s21 = smov [#allocation5]   ;;  %s18_s25 = sshll.u32 %s377_s0, 4  ;;  %s19_s25 = int_to_ptr.hbm [resolvable:$true] %s18_s25 }
   0x3   :  { %s30_s22 = sshll.u32 %s323_s21, 4  ;;  %s324_s26 = smov 64   ;;  %s31_s22 = int_to_ptr.vmem [resolvable:$true] %s30_s22 }
   0x4   :  { %s325_s27 = smov 4   ;;  %s326_s28 = smov [#allocation2]  }
   0x5   :  { %36 = dma.hbm_to_vmem [thread:$0]  %s29_s20, 256, %s31_s22, [#allocation6], %s324_s26, %s324_s26, %s325_s27  }
   0x6   :  { %s20_s29 = sshll.u32 %s326_s28, 4  ;;  %s43_s7 = sshll.u32 %s380_s3, 4  ;;  %s21_s29 = int_to_ptr.vmem [resolvable:$true] %s20_s29  ;;  %s44_s7 = int_to_ptr.hbm [resolvable:$true] %s43_s7 }
   0x7   :  { %23 = dma.hbm_to_vmem [thread:$0]  %s19_s25, 64, %s21_s29, [#allocation3]  }
   0x8   :  { %s327_s1 = smov [#allocation7]  }
   0x9   :  { %s45_s8 = sshll.u32 %s327_s1, 4  ;;  %s46_s8 = int_to_ptr.vmem [resolvable:$true] %s45_s8 }
   0xa   :  { %51 = dma.hbm_to_vmem [thread:$0]  %s44_s7, 512, %s46_s8, [#allocation6], %s324_s26, %s324_s26, %s325_s27  }
   0xb   :  { %317 = dma.done.wait [#allocation3], 64  }
   0xc   :  { %318 = vsyncadd [#allocation3], 4294967232 }
   0xd   :  { %319 = dma.done.wait [#allocation6], 768  }
   0xe   :  { %320 = vsyncadd [#allocation6], 4294966528  ;;  %v208_v0 = vld [vmem:[#allocation5 + $0x8] sm:$0xff]  ;;  %v207_v2 = vld [vmem:[#allocation5] sm:$0xff]  ;;  %vm88_vm0 = vcmask 261120   ;;  %vm144_vm1 = vcmask 523264  }
   0xf   :  { %v212_v1 = vld [vmem:[#allocation7 + $0x18] sm:$0xff]  ;;  %98 = vmatpush.bf16.msra.mxu0 %v208_v0  ;;  %v211_v3 = vld [vmem:[#allocation7 + $0x10] sm:$0xff]  ;;  %v67_v4 = vld [vmem:[#allocation2] sm:$0xf]  ;;  %s328_s11 = smov [#allocation8]   ;;  %s170_s15 = sshll.u32 %s382_s5, 4  ;;  %s171_s15 = int_to_ptr.hbm [resolvable:$true] %s170_s15 }
  0x10   :  { %152 = vmatpush.bf16.msra.mxu1 %v212_v1  ;;  %v210_v5 = vld [vmem:[#allocation7 + $0x8] sm:$0xff]  ;;  %v209_v6 = vld [vmem:[#allocation7] sm:$0xff]  ;;  %s168_s12 = sshll.u32 %s328_s11, 4  ;;  %s169_s12 = int_to_ptr.vmem [resolvable:$true] %s168_s12 }
  0x11   :  { %v219_v7 = vld [vmem:[%s379_s2] ss:$0 sm:$0xff] }
  0x12   :  { %v220_v14 = vld [vmem:[%s381_s4] ss:$0 sm:$0xff] }
  0x13   :  { %99 = vmatpush.bf16.msra.mxu0 %v207_v2 }
  0x14   :  { %153 = vmatpush.bf16.msra.mxu1 %v211_v3 }
  0x16   :  { %189 = vmatmul.msk.bf16.vlgmr.msra.gmra.mxu0 %vm88_vm0, %v67_v4 }
  0x18   :  { %154 = vmatpush.bf16.msra.mxu1 %v210_v5 }
  0x1c   :  { %155 = vmatpush.bf16.msra.mxu1 %v209_v6 }
  0x93   :  { %v101_v8 = vpop.f32.mrf.mxu0 }
  0x94   :  { %v102_v9 = vadd.f32 %v219_v7, %v101_v8 }
  0x96   :  { %v105_v10 = vmul.f32 0.2, %v102_v9 }
  0x98   :  { %v106_v11 = vmax.f32 %v102_v9, %v105_v10 }
  0x9a   :  { %v107_v12 = vpack.c.bf16 %v106_v11, %v106_v11 }
  0x9b   :  { %v103_v13 = vpop.f32.mrf.mxu0 }
  0x9c   :  { %206 = vmatmul.msk.bf16.vlgmr.msra.gmra.mxu1 %vm144_vm1, %v107_v12 }
 0x119   :  { %v157_v15 = vpop.f32.mrf.mxu1 }
 0x11a   :  { %v158_v16 = vadd.f32 %v220_v14, %v157_v15 }
 0x11c   :  { %v161_v17 = vpack.c.bf16 %v158_v16, %v158_v16 }
 0x11e   :  { %162 = vst [vmem:[#allocation8] sm:$0xf] %v161_v17 }
 0x11f   :  { %173 = dma.vmem_to_hbm [thread:$0]  %s169_s12, 64, %s171_s15, [#allocation4]  }
 0x121   :  { %v159_v18 = vpop.f32.mrf.mxu1 }
 0x122   :  { %321 = dma.done.wait [#allocation4], 64  }
 0x123   :  { %322 = vsyncadd [#allocation4], 4294967232 }
 0x124   :  { %178 = vsyncpa [#allocation3], 1 }
 0x125   :  { %179 = vsyncpa [#allocation6], 1 }
 0x126   :  { %180 = vsyncpa [#allocation4], 1 }

</bundles_post_ra>
